<compile_context>
chip_gen: v7x
topology: tpu7x:2x2x1
jax: 0.10.0
libtpu: 0.0.40
codegen_flags: <defaults>
</compile_context>

<pallas_src>
import jax
import jax.numpy as jnp
from jax.experimental import pallas as pl
from jax.experimental.pallas import tpu as pltpu


_VMEM_LIMIT_BYTES = 32 * 1024 * 1024   # explicit scoped-VMEM limit (<= physical on all gens)
_STEP_BYTES_BUDGET = 8 * 1024 * 1024   # in+out bytes per grid step; x2 buffers => ~16 MiB live


def _div255_kernel(x_ref, o_ref):
    # Load in the source dtype, do the true divide in f32 (matches torch for
    # f32 / integer inputs), store in the output dtype. Casts + divide hide
    # under HBM bandwidth in this memory-bound stream.
    x = x_ref[...].astype(jnp.float32)
    o_ref[...] = (x / jnp.float32(255.0)).astype(o_ref.dtype)


def _sublane_multiple(*dtypes) -> int:
    # Sub-32-bit dtypes pack along sublanes: min tiles are (32,128) for 8-bit,
    # (16,128) for 16-bit, (8,128) for 32-bit. Use the strictest requirement.
    m = 8
    for dt in dtypes:
        m = max(m, 32 // max(1, jnp.dtype(dt).itemsize))
    return m


def div255(x: jax.Array) -> jax.Array:
    """Compute x / 255.0 with torch Div255 semantics (ints promote to float32)."""
    orig_shape = x.shape
    in_dtype = x.dtype
    out_dtype = in_dtype if jnp.issubdtype(in_dtype, jnp.floating) else jnp.float32

    n = x.size
    if n == 0:
        return jnp.zeros(orig_shape, out_dtype)

    in_bpe = jnp.dtype(in_dtype).itemsize
    out_bpe = jnp.dtype(out_dtype).itemsize

    # Widest lane-dense column count that divides the flat size exactly.
    cols = None
    for c in (32768, 16384, 8192, 4096, 2048, 1024, 512, 256, 128):
        if n % c == 0:
            cols = c
            break

    if cols is None:
        # Rare misaligned-size path (never hit by normal image tensors). No
        # pad/slice copies: small arrays run as a single full-extent block.
        if (in_bpe + out_bpe) * n <= _STEP_BYTES_BUDGET:
            out2d = pl.pallas_call(
                _div255_kernel,
                out_shape=jax.ShapeDtypeStruct((1, n), out_dtype),
            )(x.reshape(1, n))
            return out2d.reshape(orig_shape)
        # TODO(synk): in-kernel masked tail for huge non-128-divisible sizes;
        # a single fused XLA elementwise op is already at HBM roofline here.
        return (x.astype(jnp.float32) / jnp.float32(255.0)).astype(out_dtype).reshape(orig_shape)

    rows = n // cols
    x2d = x.reshape(rows, cols)           # metadata-only reshape, no copy

    # Byte-budgeted row block, rounded to the packed-sublane multiple.
    sub = _sublane_multiple(in_dtype, out_dtype)
    tr = _STEP_BYTES_BUDGET // (cols * (in_bpe + out_bpe))
    tr = max(sub, (tr // sub) * sub)
    tile_rows = min(rows, tr)             # full-extent block is exempt from the multiple rule

    # v7x: shard the row-block axis across both TensorCores; keep the block
    # count even so both cores get work.
    kind = jax.devices()[0].device_kind.lower()
    is_v7 = "v7" in kind
    if is_v7 and tile_rows < rows:
        t = tile_rows
        while t > sub and pl.cdiv(rows, t) % 2 != 0:
            t -= sub
        if pl.cdiv(rows, t) % 2 == 0:
            tile_rows = t

    num_blocks = pl.cdiv(rows, tile_rows)
    if is_v7 and num_blocks >= 2 and num_blocks % 2 == 0:
        semantics = (pltpu.CORE_PARALLEL,)
    else:
        semantics = (pltpu.PARALLEL,)

    out2d = pl.pallas_call(
        _div255_kernel,
        out_shape=jax.ShapeDtypeStruct((rows, cols), out_dtype),
        grid_spec=pltpu.PrefetchScalarGridSpec(
            num_scalar_prefetch=0,
            grid=(num_blocks,),
            in_specs=[pl.BlockSpec((tile_rows, cols), lambda i: (i, 0))],
            out_specs=pl.BlockSpec((tile_rows, cols), lambda i: (i, 0)),
        ),
        compiler_params=pltpu.CompilerParams(
            dimension_semantics=semantics,
            vmem_limit_bytes=_VMEM_LIMIT_BYTES,
        ),
    )(x2d)

    return out2d.reshape(orig_shape)


if __name__ == "__main__":
    key = jax.random.PRNGKey(0)

    # Float NCHW image-style tensor.
    x = jax.random.uniform(key, (2, 4, 16, 16), dtype=jnp.float32) * 255.0
    y = div255(x)
    jax.block_until_ready(y)
    y_ref = x / 255.0
    assert y.shape == x.shape and y.dtype == x.dtype
    assert jnp.allclose(y, y_ref, atol=1e-7, rtol=1e-7)

    # uint8 image path: torch promotes to float32.
    xu8 = jax.random.randint(key, (3, 32, 32), 0, 256, dtype=jnp.int32).astype(jnp.uint8)
    yu = div255(xu8)
    jax.block_until_ready(yu)
    yu_ref = xu8.astype(jnp.float32) / 255.0
    assert yu.dtype == jnp.float32 and yu.shape == xu8.shape
    assert jnp.allclose(yu, yu_ref, atol=1e-7, rtol=1e-7)

    print("KERNEL_OK")
</pallas_src>

<mosaic_0001>
module attributes {stable_mosaic.version = 11 : i64} {
  func.func @_div255_kernel(%arg0: i32, %arg1: memref<1x2048xf32, #tpu.memory_space<vmem>>, %arg2: memref<1x2048xf32, #tpu.memory_space<vmem>>) attributes {dimension_semantics = [#tpu.dimension_semantics<parallel>], iteration_bounds = array<i64: 1>, scalar_prefetch = 0 : i64, scratch_operands = 0 : i64, tpu.core_type = #tpu.core_type<tc>, window_params = [{transform_indices = @transform_0, window_bounds = array<i64: 1, 2048>}, {transform_indices = @transform_1, window_bounds = array<i64: 1, 2048>}]} {
    %c0 = arith.constant 0 : index
    %c0_0 = arith.constant 0 : index
    %0 = vector.load %arg1[%c0, %c0_0] : memref<1x2048xf32, #tpu.memory_space<vmem>>, vector<1x2048xf32>
    %cst = arith.constant 2.550000e+02 : f32
    %1 = vector.broadcast %cst : f32 to vector<1x2048xf32>
    %2 = arith.divf %0, %1 : vector<1x2048xf32>
    %c0_1 = arith.constant 0 : index
    %c0_2 = arith.constant 0 : index
    %3 = vector.load %arg2[%c0_1, %c0_2] : memref<1x2048xf32, #tpu.memory_space<vmem>>, vector<1x2048xf32>
    tpu.vector_store %arg2[%c0_1, %c0_2], %2 {strides = array<i32>} : memref<1x2048xf32, #tpu.memory_space<vmem>>, vector<1x2048xf32>,
    return
  }
  func.func @transform_0(%arg0: i32) -> (i32, i32) {
    %c0_i32 = arith.constant 0 : i32
    %c0_i32_0 = arith.constant 0 : i32
    return %arg0, %c0_i32 : i32, i32
  }
  func.func @transform_1(%arg0: i32) -> (i32, i32) {
    %c0_i32 = arith.constant 0 : i32
    %c0_i32_0 = arith.constant 0 : i32
    return %arg0, %c0_i32 : i32, i32
  }
}

</mosaic_0001>

<bundles_post_ra>
// kernel: tpu_custom_call.1
= control target key start
LH: loop header
LB: loop body
LE: loop exit
PB: predicated region body
PF: predicated region fallthrough
CT: control target
= control target key end

     0   :  { %6 = vsyncpa [#allocation3], 0  ;;  %s129_s0 = inlined_call_operand.hbm [shape: f32[1,2048], index: 0, kind: input, shape index: {}]   ;;  %s130_s1 = inlined_call_operand.hbm [shape: f32[1,2048], index: 1, kind: output, shape index: {}]  }
   0x1   :  { %7 = vsyncpa [#allocation4], 0  ;;  %s93_s6 = smov [#allocation2]   ;;  %s45_s10 = scalar_lea.hbm %s129_s0, 256 }
   0x2   :  { %s14_s7 = sshll.u32 %s93_s6, 4  ;;  %p46_p0 = scmp.ne.s32.totalorder %s129_s0, %s45_s10  ;;  %s15_s7 = int_to_ptr.vmem [resolvable:$true] %s14_s7 }
   0x3   :  { %p49_p1 = scmp.lt.u32.totalorder %s45_s10, %s129_s0 }
   0x5   :  { %p51_p2 = pnand %p49_p1, %p46_p0 }
   0x7   :  { %54 = shalt.err (!%p51_p2)
}
   0x8   :  { %s55_s15 = scalar_lea.vmem %s15_s7, 256  ;;  %p60_p4 = scmp.lt.s32.totalorder %s15_s7, %s15_s7 }
   0x9   :  { %p56_p3 = scmp.ne.s32.totalorder %s15_s7, %s55_s15  ;;  %p61_p5 = scmp.lt.s32.totalorder %s55_s15, %s55_s15 }
   0xb   :  { %p62_p6 = por %p61_p5, %p60_p4 }
   0xd   :  { %p63_p7 = pnand %p62_p6, %p56_p3 }
   0xf   :  { %66 = shalt.err (!%p63_p7)
}
  0x10   :  { %17 = dma.hbm_to_vmem [thread:$0]  %s129_s0, 256, %s15_s7, [#allocation3]  }
  0x11   :  { %89 = dma.done.wait [#allocation3], 256  }
  0x12   :  { %90 = vsyncadd [#allocation3], 4294967040  ;;  %s94_s18 = smov [#allocation5]   ;;  %v21_v0 = vld [vmem:[#allocation2] sm:$0xff]  ;;  %v22_v1 = vld [vmem:[#allocation2 + $0x8] sm:$0xff] }
  0x13   :  { %s34_s19 = sshll.u32 %s94_s18, 4  ;;  %v24_v2 = vmul.f32 0.003921569, %v21_v0  ;;  %v25_v3 = vmul.f32 0.003921569, %v22_v1  ;;  %s35_s19 = int_to_ptr.vmem [resolvable:$true] %s34_s19 }
  0x14   :  { %s67_s20 = scalar_lea.vmem %s35_s19, 256  ;;  %p72_p9 = scmp.lt.s32.totalorder %s35_s19, %s35_s19 }
  0x15   :  { %26 = vst [vmem:[#allocation5] sm:$0xff] %v24_v2  ;;  %27 = vst [vmem:[#allocation5 + $0x8] sm:$0xff] %v25_v3  ;;  %p68_p8 = scmp.ne.s32.totalorder %s35_s19, %s67_s20  ;;  %p73_p10 = scmp.lt.s32.totalorder %s67_s20, %s67_s20 }
  0x17   :  { %p74_p11 = por %p73_p10, %p72_p9 }
  0x19   :  { %p75_p12 = pnand %p74_p11, %p68_p8 }
  0x1b   :  { %78 = shalt.err (!%p75_p12)
}
  0x1c   :  { %s79_s22 = scalar_lea.hbm %s130_s1, 256 }
  0x1d   :  { %p80_p13 = scmp.ne.s32.totalorder %s130_s1, %s79_s22  ;;  %p83_p0 = scmp.lt.u32.totalorder %s79_s22, %s130_s1 }
  0x1f   :  { %p85_p1 = pnand %p83_p0, %p80_p13 }
  0x21   :  { %88 = shalt.err (!%p85_p1)
}
  0x22   :  { %37 = dma.vmem_to_hbm [thread:$0]  %s35_s19, 256, %s130_s1, [#allocation4]  }
  0x23   :  { %91 = dma.done.wait [#allocation4], 256  }
  0x24   :  { %92 = vsyncadd [#allocation4], 4294967040 }
  0x25   :  { %41 = vsyncpa [#allocation3], 1 }
  0x26   :  { %42 = vsyncpa [#allocation4], 1 }

</bundles_post_ra>
